<compile_context>
chip_gen: v7x
topology: tpu7x:2x2x1
jax: 0.10.0
libtpu: 0.0.40
codegen_flags: <defaults>
</compile_context>

<pallas_src>
import functools

import jax
import jax.numpy as jnp
from jax.experimental import pallas as pl
from jax.experimental.pallas import tpu as pltpu


# --------------------------------------------------------------------------
# Chip-aware sizing
# --------------------------------------------------------------------------
@functools.lru_cache(maxsize=1)
def _hw_params():
    """Pick VMEM limit / fused threshold / tile target from the local chip."""
    vmem_cap = None
    try:
        info = pltpu.get_tpu_info()
        for attr in ("vmem_capacity_bytes", "vmem_size_bytes", "vmem_bytes"):
            val = getattr(info, attr, None)
            if val:
                vmem_cap = int(val)
                break
    except Exception:
        vmem_cap = None
    if vmem_cap is not None and vmem_cap >= 100 * 1024 * 1024:
        # v5e / v6e: 128 MiB physical VMEM.
        return {"vmem_limit": 96 << 20, "fused_max": 32 << 20, "tile_target": 8 << 20}
    # v7x (64 MiB per TC) or unknown: conservative settings that fit everywhere.
    return {"vmem_limit": 48 << 20, "fused_max": 16 << 20, "tile_target": 4 << 20}


def _pick_block_rows(rows, lane, sub, target_bytes, require_divisor=False):
    """Largest row tile ~target_bytes (sized as f32 working set) that is a
    multiple of `sub` (sublane packing) and, preferably, divides `rows`."""
    bytes_per_row = lane * 4                      # size by f32 working set
    max_rows = max(sub, (target_bytes // max(1, bytes_per_row)) // sub * sub)
    if rows <= max_rows:
        return rows
    for cand in range(max_rows, sub - 1, -sub):
        if rows % cand == 0:
            return cand
    return None if require_divisor else max_rows  # uneven grid; masked edge


# --------------------------------------------------------------------------
# Kernels
# --------------------------------------------------------------------------
def _fused_kernel(scal_ref, z_ref, z0_ref, f_ref, ssq_ref, acc_ref, *,
                  block_rows, total_rows):
    """Streamed fused pass: stage z tiles into the resident output block while
    accumulating sum((z-z0)^2); apply the flow in place on the last step.

    scal (SMEM) = [alpha, beta]."""
    i = pl.program_id(0)

    @pl.when(i == 0)
    def _():
        acc_ref[...] = jnp.zeros_like(acc_ref)

    z = z_ref[...]                                        # native dtype tile
    z_sub = z.astype(jnp.float32) - z0_ref[...]           # broadcast (1, lane)
    acc_ref[...] += jnp.sum(z_sub * z_sub, keepdims=True)

    if block_rows == total_rows:
        f_ref[...] = z                                    # single-tile staging
    else:
        off = pl.multiple_of(i * block_rows, block_rows)
        f_ref[pl.ds(off, block_rows), :] = z              # stage native tile

    @pl.when(i == pl.num_programs(0) - 1)
    def _():
        alpha = scal_ref[0]
        beta = scal_ref[1]
        r = jnp.sqrt(acc_ref[...])                        # (1, 1)
        scale = beta / (alpha + r)                        # beta * h, (1, 1)
        if block_rows == total_rows:
            zf = f_ref[...].astype(jnp.float32)
            f_ref[...] = (zf + scale * (zf - z0_ref[...])).astype(f_ref.dtype)
        else:
            def body(t, carry):
                o = pl.multiple_of(t * block_rows, block_rows)
                zt = f_ref[pl.ds(o, block_rows), :].astype(jnp.float32)
                f_ref[pl.ds(o, block_rows), :] = (
                    zt + scale * (zt - z0_ref[...])).astype(f_ref.dtype)
                return carry
            jax.lax.fori_loop(0, total_rows // block_rows, body, 0)
        ssq_ref[...] = acc_ref[...]


def _reduce_kernel(z_ref, z0_ref, part_ref, *, block_rows, total_rows):
    """Phase 1: per-tile partial sums of (z - z0)^2 ("parallel" grid axis).

    Each grid step owns its own (8, lane) output block: row 0 holds the
    per-lane partial sum, the rest are zeros; the wrapper sums everything."""
    i = pl.program_id(0)
    z_sub = z_ref[...].astype(jnp.float32) - z0_ref[...]
    sq = z_sub * z_sub                                    # (block_rows, lane)

    part_ref[...] = jnp.zeros_like(part_ref)
    part_ref[0:1, :] = jnp.sum(sq, axis=0, keepdims=True)

    if total_rows % block_rows != 0:
        # Only the final tile has padded (garbage) rows; mask just there.
        @pl.when(i == pl.num_programs(0) - 1)
        def _():
            row = jax.lax.broadcasted_iota(jnp.int32, sq.shape, 0) + i * block_rows
            sq_m = jnp.where(row < total_rows, sq, 0.0)
            part_ref[0:1, :] = jnp.sum(sq_m, axis=0, keepdims=True)


def _apply_kernel(scale_ref, z_ref, z0_ref, f_ref):
    """Phase 2: f = z + (beta*h) * (z - z0); scale (= beta*h) lives in SMEM."""
    scale = scale_ref[0]
    z = z_ref[...].astype(jnp.float32)
    f_ref[...] = (z + scale * (z - z0_ref[...])).astype(f_ref.dtype)


# --------------------------------------------------------------------------
# pallas_call wrappers
# --------------------------------------------------------------------------
def _radial_flow_fused(z2d, z0row, scal, out_dtype, block_rows, vmem_limit):
    rows, lane = z2d.shape
    itemsize = jnp.dtype(out_dtype).itemsize
    n_tiles = rows // block_rows
    kernel = functools.partial(_fused_kernel, block_rows=block_rows,
                               total_rows=rows)
    return pl.pallas_call(
        kernel,
        out_shape=(
            jax.ShapeDtypeStruct((rows, lane), out_dtype),
            jax.ShapeDtypeStruct((1, 1), jnp.float32),
        ),
        grid=(n_tiles,),
        in_specs=[
            pl.BlockSpec(memory_space=pltpu.MemorySpace.SMEM),
            pl.BlockSpec((block_rows, lane), lambda i: (i, 0)),
            pl.BlockSpec((1, lane), lambda i: (0, 0)),
        ],
        out_specs=(
            pl.BlockSpec((rows, lane), lambda i: (0, 0)),   # resident output
            pl.BlockSpec((1, 1), lambda i: (0, 0)),
        ),
        scratch_shapes=[pltpu.VMEM((1, 1), jnp.float32)],
        compiler_params=pltpu.CompilerParams(
            dimension_semantics=("arbitrary",),
            vmem_limit_bytes=vmem_limit,
        ),
        cost_estimate=pl.CostEstimate(
            flops=6 * rows * lane,
            transcendentals=2,
            bytes_accessed=2 * rows * lane * itemsize + 4 * lane + 16,
        ),
    )(scal, z2d, z0row)


def _radial_flow_reduce(z2d, z0row, block_rows, vmem_limit):
    rows, lane = z2d.shape
    itemsize = jnp.dtype(z2d.dtype).itemsize
    n_tiles = (rows + block_rows - 1) // block_rows
    kernel = functools.partial(_reduce_kernel, block_rows=block_rows,
                               total_rows=rows)
    return pl.pallas_call(
        kernel,
        out_shape=jax.ShapeDtypeStruct((n_tiles * 8, lane), jnp.float32),
        grid=(n_tiles,),
        in_specs=[
            pl.BlockSpec((block_rows, lane), lambda i: (i, 0)),
            pl.BlockSpec((1, lane), lambda i: (0, 0)),
        ],
        out_specs=pl.BlockSpec((8, lane), lambda i: (i, 0)),  # distinct block / step
        compiler_params=pltpu.CompilerParams(
            dimension_semantics=("parallel",),   # megacore-shardable on v7x
            vmem_limit_bytes=vmem_limit,
        ),
        cost_estimate=pl.CostEstimate(
            flops=3 * rows * lane,
            transcendentals=0,
            bytes_accessed=rows * lane * itemsize + 4 * lane + n_tiles * 8 * lane * 4,
        ),
    )(z2d, z0row)


def _radial_flow_apply(z2d, z0row, scale, block_rows, out_dtype, vmem_limit):
    rows, lane = z2d.shape
    itemsize = jnp.dtype(z2d.dtype).itemsize
    return pl.pallas_call(
        _apply_kernel,
        out_shape=jax.ShapeDtypeStruct((rows, lane), out_dtype),
        grid=((rows + block_rows - 1) // block_rows,),
        in_specs=[
            pl.BlockSpec(memory_space=pltpu.MemorySpace.SMEM),
            pl.BlockSpec((block_rows, lane), lambda i: (i, 0)),
            pl.BlockSpec((1, lane), lambda i: (0, 0)),
        ],
        out_specs=pl.BlockSpec((block_rows, lane), lambda i: (i, 0)),
        compiler_params=pltpu.CompilerParams(
            dimension_semantics=("parallel",),   # megacore-shardable on v7x
            vmem_limit_bytes=vmem_limit,
        ),
        cost_estimate=pl.CostEstimate(
            flops=3 * rows * lane,
            transcendentals=0,
            bytes_accessed=2 * rows * lane * itemsize + 4 * lane + 4,
        ),
    )(scale, z2d, z0row)


# --------------------------------------------------------------------------
# Public entry point
# --------------------------------------------------------------------------
def radial_flow(z, z0, log_alpha, beta, *,
                fused_max_bytes=None, block_rows=None,
                fused_tile_bytes=None, tile_target_bytes=None):
    """Pallas-backed RadialFlow.forward.

    Args:
      z:         (B, latent_dim) array (any float dtype; streamed natively)
      z0:        (latent_dim,)   array
      log_alpha: (1,)            array
      beta:      (1,)            array
    Returns:
      f:       (B, latent_dim) array (z.dtype)
      log_det: (1,)            float32
    """
    B, D = z.shape
    out_dtype = z.dtype
    itemsize = jnp.dtype(z.dtype).itemsize
    sub = max(8, 32 // max(1, itemsize))          # sublane multiple (8/16/32)

    hw = _hw_params()
    vmem_limit = hw["vmem_limit"]
    if fused_max_bytes is None:
        fused_max_bytes = hw["fused_max"]
    if tile_target_bytes is None:
        tile_target_bytes = hw["tile_target"]
    if fused_tile_bytes is None:
        fused_tile_bytes = min(2 << 20, tile_target_bytes)

    z0f = z0.astype(jnp.float32)
    la = jnp.reshape(log_alpha, (1,)).astype(jnp.float32)
    be = jnp.reshape(beta, (1,)).astype(jnp.float32)

    # ---- layout selection (static): make the lane axis 128-dense if we can.
    if D % 128 == 0:
        z2d = z
        z0row = z0f.reshape(1, D)
    elif 128 % D == 0 and (B * D) % 128 == 0:
        rows = (B * D) // 128
        z2d = z.reshape(rows, 128)
        z0row = jnp.tile(z0f, 128 // D).reshape(1, 128)
    else:
        # TODO(synk): periodic-z0 lane packing for awkward D (neither divides
        # nor is divided by 128); this fallback keeps a (B, D) layout whose
        # stores are lane-masked when D % 128 != 0.
        z2d = z
        z0row = z0f.reshape(1, D)
    rows, lane = z2d.shape

    alpha = jnp.exp(la)                           # (1,)
    nbytes = rows * lane * itemsize

    # ---- path selection
    use_fused = nbytes <= fused_max_bytes
    fb = None
    if use_fused:
        if block_rows is not None and rows % block_rows == 0:
            fb = block_rows
        else:
            fb = _pick_block_rows(rows, lane, sub, fused_tile_bytes,
                                  require_divisor=True)
        if fb is None:
            if nbytes <= (4 << 20):
                fb = rows                         # tiny, no clean divisor: 1 tile
            else:
                use_fused = False                 # awkward shape: two-phase

    if use_fused:
        # Fused streamed pass: 1x HBM read + 1x HBM write.
        scal = jnp.concatenate([alpha, be]).astype(jnp.float32)  # [alpha, beta]
        f2d, ssq = _radial_flow_fused(z2d, z0row, scal, out_dtype, fb, vmem_limit)
        sumsq = ssq[0, 0]
    else:
        # Two-phase: global r must be known before any f tile is written.
        if block_rows is not None:
            rb = ab = block_rows
        else:
            rb = _pick_block_rows(rows, lane, sub, 2 * tile_target_bytes)
            ab = _pick_block_rows(rows, lane, sub, tile_target_bytes)
        partials = _radial_flow_reduce(z2d, z0row, rb, vmem_limit)
        sumsq = jnp.sum(partials)
        r = jnp.sqrt(sumsq)
        scale = (be / (alpha + r)).astype(jnp.float32)            # beta * h, (1,)
        f2d = _radial_flow_apply(z2d, z0row, scale, ab, out_dtype, vmem_limit)

    # Scalar epilogue (O(1) work) — identical formula to the PyTorch module.
    r = jnp.sqrt(sumsq)
    h = 1.0 / (alpha + r)                        # (1,)
    bh = be * h
    log_det = (D - 1) * jnp.log(1.0 + bh) + jnp.log(
        1.0 + bh + be - be * r / (alpha + r) ** 2
    )

    f = f2d.reshape(B, D)
    return f, log_det


def radial_flow_ref(z, z0, log_alpha, beta):
    """Pure-JAX reference matching the PyTorch semantics."""
    z_sub = z - z0
    alpha = jnp.exp(log_alpha)
    r = jnp.sqrt(jnp.sum(z_sub * z_sub))
    h = 1.0 / (alpha + r)
    f = z + beta * h * z_sub
    D = z.shape[1]
    log_det = (D - 1) * jnp.log(1 + beta * h) + jnp.log(
        1 + beta * h + beta - beta * r / (alpha + r) ** 2
    )
    return f, log_det


if __name__ == "__main__":
    key = jax.random.PRNGKey(0)
    k_z, k_z0, k_la, k_b = jax.random.split(key, 4)

    def run_case(batch, dim, dtype, tol, **kwargs):
        # Deterministic "parameters" (nn.init.normal_ equivalents; beta kept
        # positive so the log terms stay finite across all test batch sizes).
        z0 = jax.random.normal(k_z0, (dim,), dtype=jnp.float32)
        log_alpha = jax.random.normal(k_la, (1,), dtype=jnp.float32)
        beta = jnp.abs(jax.random.normal(k_b, (1,), dtype=jnp.float32)) + 0.1
        z = jax.random.normal(k_z, (batch, dim), dtype=jnp.float32).astype(dtype)

        f, log_det = radial_flow(z, z0, log_alpha, beta, **kwargs)
        f = jax.block_until_ready(f)
        log_det = jax.block_until_ready(log_det)

        f_ref, ld_ref = radial_flow_ref(z.astype(jnp.float32), z0, log_alpha, beta)
        assert f.shape == (batch, dim) and log_det.shape == (1,), (batch, dim)
        assert jnp.allclose(f.astype(jnp.float32), f_ref, atol=tol, rtol=tol), \
            ("f mismatch", batch, dim, dtype, kwargs)
        assert jnp.allclose(log_det, ld_ref, atol=tol, rtol=tol), \
            ("log_det mismatch", batch, dim, dtype, kwargs)

    # fused, lane-dense flatten (rows=2, lane=128), single tile
    run_case(8, 32, jnp.float32, 1e-4)
    # fused, (B, D) fallback layout (D=48 not lane-dense)
    run_case(16, 48, jnp.float32, 1e-4)
    # fused streamed path with multiple tiles + in-place final apply (bf16)
    run_case(64, 64, jnp.bfloat16, 2e-2, fused_tile_bytes=4096)
    # two-phase, even grid, partial-sum reduce + parallel apply (f32)
    run_case(64, 32, jnp.float32, 1e-4, fused_max_bytes=0, block_rows=8)
    # two-phase, uneven grid with masked edge tile (f32)
    run_case(100, 32, jnp.float32, 1e-4, fused_max_bytes=0, block_rows=8)
    # two-phase, native bf16 streaming (sublane-16 tiles)
    run_case(128, 64, jnp.bfloat16, 2e-2, fused_max_bytes=0, block_rows=16)

    print("KERNEL_OK")
</pallas_src>

<mosaic_0001>
module attributes {stable_mosaic.version = 11 : i64} {
  func.func @_fused_kernel(%arg0: i32, %arg1: memref<2xf32, #tpu.memory_space<smem>>, %arg2: memref<2x128xf32, #tpu.memory_space<vmem>>, %arg3: memref<1x128xf32, #tpu.memory_space<vmem>>, %arg4: memref<2x128xf32, #tpu.memory_space<vmem>>, %arg5: memref<1x1xf32, #tpu.memory_space<vmem>>, %arg6: memref<1x1xf32, #tpu.memory_space<vmem>>) attributes {dimension_semantics = [#tpu.dimension_semantics<arbitrary>], iteration_bounds = array<i64: 1>, scalar_prefetch = 0 : i64, scratch_operands = 1 : i64, tpu.core_type = #tpu.core_type<tc>, window_params = [{transform_indices = @transform_0, window_bounds = array<i64: 2>}, {transform_indices = @transform_1, window_bounds = array<i64: 2, 128>}, {pipeline_mode = #tpu.pipeline_mode<synchronous>, transform_indices = @transform_2, window_bounds = array<i64: 1, 128>}, {pipeline_mode = #tpu.pipeline_mode<synchronous>, transform_indices = @transform_3, window_bounds = array<i64: 2, 128>}, {pipeline_mode = #tpu.pipeline_mode<synchronous>, transform_indices = @transform_4, window_bounds = array<i64: 1, 1>}]} {
    %c0_i32 = arith.constant 0 : i32
    %0 = arith.cmpi eq, %arg0, %c0_i32 : i32
    %1 = arith.extui %0 : i1 to i32
    %c0_i32_0 = arith.constant 0 : i32
    %2 = arith.cmpi ne, %1, %c0_i32_0 : i32
    scf.if %2 {
      %cst_12 = arith.constant 0.000000e+00 : f32
      %20 = vector.broadcast %cst_12 : f32 to vector<1x1xf32>
      %c0_13 = arith.constant 0 : index
      %c0_14 = arith.constant 0 : index
      %21 = vector.load %arg6[%c0_13, %c0_14] : memref<1x1xf32, #tpu.memory_space<vmem>>, vector<1x1xf32>
      tpu.vector_store %arg6[%c0_13, %c0_14], %20 {strides = array<i32>} : memref<1x1xf32, #tpu.memory_space<vmem>>, vector<1x1xf32>,
    } else {
    }
    %c0 = arith.constant 0 : index
    %c0_1 = arith.constant 0 : index
    %3 = vector.load %arg2[%c0, %c0_1] : memref<2x128xf32, #tpu.memory_space<vmem>>, vector<2x128xf32>
    %c0_2 = arith.constant 0 : index
    %c0_3 = arith.constant 0 : index
    %4 = vector.load %arg3[%c0_2, %c0_3] : memref<1x128xf32, #tpu.memory_space<vmem>>, vector<1x128xf32>
    %5 = vector.broadcast %4 : vector<1x128xf32> to vector<2x128xf32>
    %6 = arith.subf %3, %5 : vector<2x128xf32>
    %c0_4 = arith.constant 0 : index
    %c0_5 = arith.constant 0 : index
    %7 = vector.load %arg6[%c0_4, %c0_5] : memref<1x1xf32, #tpu.memory_space<vmem>>, vector<1x1xf32>
    %8 = arith.mulf %6, %6 : vector<2x128xf32>
    %9 = vector.shape_cast %8 : vector<2x128xf32> to vector<1x2x128xf32>
    %cst = arith.constant dense<0.000000e+00> : vector<1xf32>
    %10 = vector.multi_reduction <add>, %9, %cst [1, 2] : vector<1x2x128xf32> to vector<1xf32>
    %11 = vector.shape_cast %10 : vector<1xf32> to vector<1x1x1xf32>
    %12 = vector.extract %11[0, 0, 0] : f32 from vector<1x1x1xf32>
    %13 = vector.broadcast %12 : f32 to vector<1x1xf32>
    %14 = arith.addf %7, %13 : vector<1x1xf32>
    %c0_6 = arith.constant 0 : index
    %c0_7 = arith.constant 0 : index
    %15 = vector.load %arg6[%c0_6, %c0_7] : memref<1x1xf32, #tpu.memory_space<vmem>>, vector<1x1xf32>
    tpu.vector_store %arg6[%c0_6, %c0_7], %14 {strides = array<i32>} : memref<1x1xf32, #tpu.memory_space<vmem>>, vector<1x1xf32>,
    %c0_8 = arith.constant 0 : index
    %c0_9 = arith.constant 0 : index
    %16 = vector.load %arg4[%c0_8, %c0_9] : memref<2x128xf32, #tpu.memory_space<vmem>>, vector<2x128xf32>
    tpu.vector_store %arg4[%c0_8, %c0_9], %3 {strides = array<i32>} : memref<2x128xf32, #tpu.memory_space<vmem>>, vector<2x128xf32>,
    %c0_i32_10 = arith.constant 0 : i32
    %17 = arith.cmpi eq, %arg0, %c0_i32_10 : i32
    %18 = arith.extui %17 : i1 to i32
    %c0_i32_11 = arith.constant 0 : i32
    %19 = arith.cmpi ne, %18, %c0_i32_11 : i32
    scf.if %19 {
      %c0_12 = arith.constant 0 : index
      %20 = memref.load %arg1[%c0_12] : memref<2xf32, #tpu.memory_space<smem>>
      %c1 = arith.constant 1 : index
      %21 = memref.load %arg1[%c1] : memref<2xf32, #tpu.memory_space<smem>>
      %c0_13 = arith.constant 0 : index
      %c0_14 = arith.constant 0 : index
      %22 = vector.load %arg6[%c0_13, %c0_14] : memref<1x1xf32, #tpu.memory_space<vmem>>, vector<1x1xf32>
      %23 = math.sqrt %22 : vector<1x1xf32>
      %24 = vector.broadcast %20 : f32 to vector<1x1xf32>
      %25 = arith.addf %24, %23 : vector<1x1xf32>
      %26 = vector.broadcast %21 : f32 to vector<1x1xf32>
      %27 = arith.divf %26, %25 : vector<1x1xf32>
      %c0_15 = arith.constant 0 : index
      %c0_16 = arith.constant 0 : index
      %28 = vector.load %arg4[%c0_15, %c0_16] : memref<2x128xf32, #tpu.memory_space<vmem>>, vector<2x128xf32>
      %c0_17 = arith.constant 0 : index
      %c0_18 = arith.constant 0 : index
      %29 = vector.load %arg3[%c0_17, %c0_18] : memref<1x128xf32, #tpu.memory_space<vmem>>, vector<1x128xf32>
      %30 = vector.broadcast %29 : vector<1x128xf32> to vector<2x128xf32>
      %31 = arith.subf %28, %30 : vector<2x128xf32>
      %32 = vector.broadcast %27 : vector<1x1xf32> to vector<2x128xf32>
      %33 = arith.mulf %32, %31 : vector<2x128xf32>
      %34 = arith.addf %28, %33 : vector<2x128xf32>
      %c0_19 = arith.constant 0 : index
      %c0_20 = arith.constant 0 : index
      %35 = vector.load %arg4[%c0_19, %c0_20] : memref<2x128xf32, #tpu.memory_space<vmem>>, vector<2x128xf32>
      tpu.vector_store %arg4[%c0_19, %c0_20], %34 {strides = array<i32>} : memref<2x128xf32, #tpu.memory_space<vmem>>, vector<2x128xf32>,
      %c0_21 = arith.constant 0 : index
      %c0_22 = arith.constant 0 : index
      %36 = vector.load %arg6[%c0_21, %c0_22] : memref<1x1xf32, #tpu.memory_space<vmem>>, vector<1x1xf32>
      %c0_23 = arith.constant 0 : index
      %c0_24 = arith.constant 0 : index
      %37 = vector.load %arg5[%c0_23, %c0_24] : memref<1x1xf32, #tpu.memory_space<vmem>>, vector<1x1xf32>
      tpu.vector_store %arg5[%c0_23, %c0_24], %36 {strides = array<i32>} : memref<1x1xf32, #tpu.memory_space<vmem>>, vector<1x1xf32>,
    } else {
    }
    return
  }
  func.func @transform_0(%arg0: i32) -> i32 {
    %c0_i32 = arith.constant 0 : i32
    %c0_i32_0 = arith.constant 0 : i32
    return %c0_i32 : i32
  }
  func.func @transform_1(%arg0: i32) -> (i32, i32) {
    %c0_i32 = arith.constant 0 : i32
    %c0_i32_0 = arith.constant 0 : i32
    return %arg0, %c0_i32 : i32, i32
  }
  func.func @transform_2(%arg0: i32) -> (i32, i32) {
    %c0_i32 = arith.constant 0 : i32
    %c0_i32_0 = arith.constant 0 : i32
    %c0_i32_1 = arith.constant 0 : i32
    return %c0_i32, %c0_i32_0 : i32, i32
  }
  func.func @transform_3(%arg0: i32) -> (i32, i32) {
    %c0_i32 = arith.constant 0 : i32
    %c0_i32_0 = arith.constant 0 : i32
    %c0_i32_1 = arith.constant 0 : i32
    return %c0_i32, %c0_i32_0 : i32, i32
  }
  func.func @transform_4(%arg0: i32) -> (i32, i32) {
    %c0_i32 = arith.constant 0 : i32
    %c0_i32_0 = arith.constant 0 : i32
    %c0_i32_1 = arith.constant 0 : i32
    return %c0_i32, %c0_i32_0 : i32, i32
  }
}

</mosaic_0001>

<bundles_post_ra>
// kernel: tpu_custom_call.1
= control target key start
LH: loop header
LB: loop body
LE: loop exit
PB: predicated region body
PF: predicated region fallthrough
CT: control target
= control target key end

     0   :  { %10 = vsyncpa [#allocation5], 0  ;;  %s286_s0 = inlined_call_operand.hbm [shape: f32[2], index: 0, kind: input, shape index: {}]   ;;  %s287_s1 = inlined_call_operand.vmem [shape: f32[2,128], index: 1, kind: input, shape index: {}]   ;;  %s288_s2 = inlined_call_operand.vmem [shape: f32[1,128], index: 2, kind: input, shape index: {}]   ;;  %s289_s3 = inlined_call_operand.hbm [shape: f32[2,128], index: 3, kind: output, shape index: {0}]   ;;  %s290_s4 = inlined_call_operand.hbm [shape: f32[1,1], index: 4, kind: output, shape index: {1}]  }
   0x1   :  { %11 = vsyncpa [#allocation4], 0 }
   0x2   :  { %12 = vsyncpa [#allocation8], 0  ;;  %s147_s17 = scalar_lea.hbm %s286_s0, 16 }
   0x3   :  { %p148_p0 = scmp.ne.s32.totalorder %s286_s0, %s147_s17  ;;  %p151_p1 = scmp.lt.u32.totalorder %s147_s17, %s286_s0 }
   0x5   :  { %p153_p2 = pnand %p151_p1, %p148_p0 }
   0x7   :  { %156 = shalt.err (!%p153_p2)
}
   0x8   :  { %s207_s22 = smov [#allocation3]  }
   0x9   :  { %20 = dma.hbm_to_smem %s286_s0, 16, %s207_s22, [#allocation5]  }
   0xa   :  { %201 = dma.done.wait [#allocation5], 16  }
   0xb   :  { %202 = vsyncadd [#allocation5], 4294967280 }
   0xc   :  { %28 = sfence }
   0xd   :  { %v35_v0 = vld [vmem:[%s287_s1] sm:$0x3]  ;;  %vm46_vm0 = vcmask 1041408   ;;  %vm33_vm1 = vcmask 0   ;;  %v208_v5 = vmov 0.0   ;;  %v209_v6 = vmov 0  }
   0xe   :  { %v255_v1 = vld [vmem:[%s288_s2] ss:$0 sm:$0xff]  ;;  %61 = vst [vmem:[#allocation6] sm:$0x3] %v35_v0  ;;  %34 = vst.msk [vmem:[#allocation2] sm:$0x1] %vm33_vm1, %v208_v5  ;;  %142 = vset.pattern.permute.xlu0 %v209_v6  ;;  %v90_v26 = vlaneseq }
   0xf   :  { %v43_v2 = vsub.f32 %v35_v0, %v255_v1  ;;  %s65_s1 = sld [smem:[#allocation3]]  ;;  %s133_s2 = sld [smem:[#allocation3 + $0x1]] }
  0x10   :  { %v91_v27 = vshrl.u32 %v90_v26, 7  ;;  %s210_s29 = smov [#allocation7]  }
  0x11   :  { %v45_v3 = vmul.f32 %v43_v2, %v43_v2  ;;  %s119_s30 = sshll.u32 %s210_s29, 4  ;;  %s120_s30 = int_to_ptr.vmem [resolvable:$true] %s119_s30 }
  0x12   :  { %v92_v29 = vsub.s32 0, %v91_v27  ;;  %s157_s5 = scalar_lea.vmem %s120_s30, 16  ;;  %s161_s6 = scalar_lea.vmem %s120_s30, 32 }
  0x13   :  { %v47_v4 = vsel %vm46_vm0, %v45_v3, 0.0  ;;  %p158_p3 = scmp.ne.s32.totalorder %s120_s30, %s157_s5  ;;  %p162_p4 = scmp.lt.s32.totalorder %s120_s30, %s120_s30 }
  0x14   :  { %48 = vadd.xlane.f32.xlu0 %v47_v4  ;;  %p163_p5 = scmp.lt.s32.totalorder %s161_s6, %s157_s5 }
  0x15   :  { %v44_v14 = vld [vmem:[#allocation2] sm:$0x1]  ;;  %v75_v22 = vstv %s65_s1  ;;  %v77_v28 = vstv %s133_s2 }
  0x16   :  { %p164_p6 = por %p163_p5, %p162_p4 }
  0x18   :  { %p165_p7 = pnand %p164_p6, %p158_p3 }
  0xa1   :  { %v49_v7 = vpop.xlane.xlu0 %48 }
  0xa2   :  { %v50_v8 = vrot.slane %v49_v7, 4 }
  0xa4   :  { %v51_v9 = vadd.f32 %v50_v8, %v49_v7 }
  0xa6   :  { %v52_v10 = vrot.slane %v51_v9, 2 }
  0xa8   :  { %v53_v11 = vadd.f32 %v52_v10, %v51_v9 }
  0xaa   :  { %v54_v12 = vrot.slane %v53_v11, 1 }
  0xac   :  { %v55_v13 = vadd.f32 %v54_v12, %v53_v11 }
  0xae   :  { %135 = vpush %v55_v13 }
  0xdf   :  { %s136_s0 = spop %135 }
  0xe0   :  { %v57_v15 = vstv %s136_s0 }
  0xe1   :  { %v58_v16 = vadd.f32 %v57_v15, %v44_v14 }
  0xe3   :  { %60 = vst.msk [vmem:[#allocation2] sm:$0x1] %vm33_vm1, %v58_v16 }
  0xea   :  { %v67_v17 = vld [vmem:[#allocation2] sm:$0x1] }
  0xeb   :  { %v101_v18 = vld [vmem:[#allocation2] sm:$0x1]  ;;  %143 = vrsqrt.f32 %v67_v17  ;;  %vm70_vm2 = vcmp.eq.f32.partialorder %v67_v17, inf  ;;  %v73_v21 = vand.u32 2147483648, %v67_v17  ;;  %vm72_vm3 = vcmp.eq.f32.partialorder %v67_v17, 0.0 }
  0xec   :  { %102 = vst.msk [vmem:[#allocation7] sm:$0x1] %vm33_vm1, %v101_v18 }
  0xf5   :  { %v144_v19 = vpop.eup %143 }
  0xf6   :  { %v69_v20 = vmul.f32 %v144_v19, %v67_v17 }
  0xf8   :  { %v71_v23 = vsel %vm70_vm2, %v67_v17, %v69_v20 }
  0xf9   :  { %v74_v24 = vsel %vm72_vm3, %v73_v21, %v71_v23 }
  0xfa   :  { %v76_v25 = vadd.f32 %v75_v22, %v74_v24 }
  0xfc   :  { %145 = vrcp.f32 %v76_v25 }
 0x106   :  { %v146_v30 = vpop.eup %145 }
 0x107   :  { %v79_v31 = vmul.f32 %v146_v30, %v77_v28 }
 0x109   :  { %v93_v32 = vrot.slane %v79_v31, %v92_v29 }
 0x10b   :  { %95 = vperm.xlu0 %142, %v93_v32  }
 0x10c   :  { %168 = shalt.err (!%p165_p7)
}
 0x10d   :  { %s169_s9 = scalar_lea.hbm %s290_s4, 16 }
 0x10e   :  { %p170_p8 = scmp.ne.s32.totalorder %s290_s4, %s169_s9  ;;  %p173_p9 = scmp.lt.u32.totalorder %s169_s9, %s290_s4 }
 0x110   :  { %p175_p10 = pnand %p173_p9, %p170_p8 }
 0x112   :  { %178 = shalt.err (!%p175_p10)
}
 0x113   :  { %122 = dma.vmem_to_hbm [thread:$0]  %s120_s30, 16, %s290_s4, [#allocation8]   ;;  %v80_v33 = vld [vmem:[#allocation6] sm:$0x3] }
 0x114   :  { %v88_v34 = vsub.f32 %v80_v33, %v255_v1  ;;  %s211_s16 = smov [#allocation6]  }
 0x115   :  { %s109_s17 = sshll.u32 %s211_s16, 4  ;;  %s110_s17 = int_to_ptr.vmem [resolvable:$true] %s109_s17 }
 0x116   :  { %s179_s18 = scalar_lea.vmem %s110_s17, 32  ;;  %p184_p12 = scmp.lt.s32.totalorder %s110_s17, %s110_s17 }
 0x117   :  { %p180_p11 = scmp.ne.s32.totalorder %s110_s17, %s179_s18  ;;  %p185_p13 = scmp.lt.s32.totalorder %s179_s18, %s179_s18 }
 0x119   :  { %p186_p0 = por %p185_p13, %p184_p12 }
 0x11b   :  { %p187_p1 = pnand %p186_p0, %p180_p11 }
 0x18a   :  { %v96_v35 = vpop.permute.xlu0 %95 }
 0x18b   :  { %v98_v36 = vmul.f32 %v96_v35, %v88_v34 }
 0x18d   :  { %v99_v37 = vadd.f32 %v98_v36, %v80_v33 }
 0x18f   :  { %100 = vst [vmem:[#allocation6] sm:$0x3] %v99_v37 }
 0x190   :  { %190 = shalt.err (!%p187_p1)
}
 0x191   :  { %s191_s4 = scalar_lea.hbm %s289_s3, 32 }
 0x192   :  { %p192_p2 = scmp.ne.s32.totalorder %s289_s3, %s191_s4  ;;  %p195_p3 = scmp.lt.u32.totalorder %s191_s4, %s289_s3 }
 0x194   :  { %p197_p4 = pnand %p195_p3, %p192_p2 }
 0x196   :  { %200 = shalt.err (!%p197_p4)
}
 0x197   :  { %112 = dma.vmem_to_hbm [thread:$0]  %s110_s17, 32, %s289_s3, [#allocation4]  }
 0x198   :  { %203 = dma.done.wait [#allocation4], 32  }
 0x199   :  { %204 = vsyncadd [#allocation4], 4294967264 }
 0x19a   :  { %205 = dma.done.wait [#allocation8], 16  }
 0x19b   :  { %206 = vsyncadd [#allocation8], 4294967280 }
 0x19c   :  { %129 = vsyncpa [#allocation4], 1 }
 0x19d   :  { %130 = vsyncpa [#allocation8], 1 }
 0x19e   :  { %131 = vsyncpa [#allocation5], 1 }

</bundles_post_ra>
